<compile_context>
chip_gen: v7x
topology: tpu7x:2x2x1
jax: 0.10.0
libtpu: 0.0.40
codegen_flags: <defaults>
</compile_context>

<pallas_src>
import jax
import jax.numpy as jnp
from jax.experimental import pallas as pl
from jax.experimental.pallas import tpu as pltpu

LANE = 128          # TPU lane width: output last dim is padded to this
NEG_INF = -1e30     # bias value for padded logit lanes -> softmax(pad) == 0


def _leaky_relu(x, negative_slope=0.01):
    return jnp.where(x >= 0, x, negative_slope * x)


def _round_up(n, m):
    return ((n + m - 1) // m) * m


def actor_kernel(x_ref, w1_ref, b1_ref, w2_ref, b2_ref, w3_ref, b3_ref, o_ref):
    # x tile streams in (bf16 or f32); all math runs in f32 (v5e has no bf16
    # VPU/EUP, and f32 accumulation keeps numerics identical to the reference).
    x = x_ref[...].astype(jnp.float32)

    # Biases read once (hoisted) — straight-line body, but guards against a
    # future loop refactor re-materializing the broadcasts per iteration.
    b1 = b1_ref[...]
    b2 = b2_ref[...]
    b3 = b3_ref[...]

    h1 = _leaky_relu(
        jnp.dot(x, w1_ref[...], preferred_element_type=jnp.float32) + b1)
    h2 = _leaky_relu(
        jnp.dot(h1, w2_ref[...], preferred_element_type=jnp.float32) + b2)

    # logits are lane-padded to 128; padded columns carry b3 == -1e30 so they
    # contribute exactly 0 to the softmax numerator and denominator.
    logits = jnp.dot(h2, w3_ref[...], preferred_element_type=jnp.float32) + b3

    m = jnp.max(logits, axis=-1, keepdims=True)
    e = jnp.exp(logits - m)
    denom = jnp.sum(e, axis=-1, keepdims=True)
    # Reciprocal-multiply instead of divide; exact so rows sum to 1 within ulps.
    o_ref[...] = (e * pl.reciprocal(denom, approx=False)).astype(o_ref.dtype)


def actor_forward(x, params, *, tile_b=512, stream_dtype=jnp.bfloat16):
    """x: (B, state_dim) float32. params: dict of w1,b1,w2,b2,w3,b3 (f32)."""
    B, state_dim = x.shape
    hidden = params["w1"].shape[1]
    act_dim = params["w3"].shape[1]

    # --- lane-dense output: pad act_dim up to a multiple of 128 ------------
    act_pad = _round_up(act_dim, LANE)
    w3 = params["w3"]
    b3 = params["b3"]
    if act_pad != act_dim:
        w3 = jnp.pad(w3, ((0, 0), (0, act_pad - act_dim)))
        b3 = jnp.pad(b3, ((0, 0), (0, act_pad - act_dim)),
                     constant_values=NEG_INF)

    # --- batch tiling: pick the largest tile <= tile_b that B needs --------
    # (multiple of 16 keeps bf16 sublane packing happy; B is padded so the
    # grid divides exactly and padded rows are sliced away below.)
    tile_b = int(max(16, min(_round_up(tile_b, 16), _round_up(B, 16))))
    b_pad = _round_up(B, tile_b)

    x_in = x.astype(stream_dtype)
    if b_pad != B:
        x_in = jnp.pad(x_in, ((0, b_pad - B), (0, 0)))

    grid = (b_pad // tile_b,)
    const = lambda i: (0, 0)   # weights/biases: block index never changes → stay resident in VMEM

    out = pl.pallas_call(
        actor_kernel,
        out_shape=jax.ShapeDtypeStruct((b_pad, act_pad), jnp.float32),
        grid=grid,
        in_specs=[
            pl.BlockSpec((tile_b, state_dim), lambda i: (i, 0)),   # x (streamed)
            pl.BlockSpec((state_dim, hidden), const),              # w1
            pl.BlockSpec((1, hidden), const),                      # b1
            pl.BlockSpec((hidden, hidden), const),                 # w2
            pl.BlockSpec((1, hidden), const),                      # b2
            pl.BlockSpec((hidden, act_pad), const),                # w3 (lane-padded)
            pl.BlockSpec((1, act_pad), const),                     # b3 (lane-padded, -1e30 pads)
        ],
        out_specs=pl.BlockSpec((tile_b, act_pad), lambda i: (i, 0)),
        compiler_params=pltpu.CompilerParams(
            # batch tiles are independent → shard across both TCs on v7x
            dimension_semantics=("parallel",),
        ),
    )(
        x_in,
        params["w1"], params["b1"],
        params["w2"], params["b2"],
        w3, b3,
    )

    # Strip batch padding and lane padding in the wrapper (cheap XLA slices).
    return out[:B, :act_dim]


def init_params(key, state_dim, act_dim, hidden=64):
    """Deterministic synthetic init (PyTorch Linear uses U(-1/sqrt(in), 1/sqrt(in)))."""
    ks = jax.random.split(key, 6)

    def uniform(k, shape, fan_in):
        bound = 1.0 / jnp.sqrt(fan_in)
        return jax.random.uniform(k, shape, jnp.float32, -bound, bound)

    return {
        "w1": uniform(ks[0], (state_dim, hidden), state_dim),
        "b1": uniform(ks[1], (1, hidden), state_dim),
        "w2": uniform(ks[2], (hidden, hidden), hidden),
        "b2": uniform(ks[3], (1, hidden), hidden),
        "w3": uniform(ks[4], (hidden, act_dim), hidden),
        "b3": uniform(ks[5], (1, act_dim), hidden),
    }


def actor_reference(x, p):
    """Plain-JAX reference for correctness checking."""
    h1 = _leaky_relu(x @ p["w1"] + p["b1"])
    h2 = _leaky_relu(h1 @ p["w2"] + p["b2"])
    logits = h2 @ p["w3"] + p["b3"]
    return jax.nn.softmax(logits, axis=-1)


if __name__ == "__main__":
    key = jax.random.PRNGKey(0)
    k_param, k_x = jax.random.split(key)

    # Small test shapes. NOTE: at B=2 the call is dominated by launch/step
    # overhead — benchmark / tune tile_b at production batch sizes (>=512).
    B, STATE_DIM, ACT_DIM = 2, 16, 8
    params = init_params(k_param, STATE_DIM, ACT_DIM)
    x = jax.random.normal(k_x, (B, STATE_DIM), jnp.float32)

    out = actor_forward(x, params)
    out = jax.block_until_ready(out)

    # Reference uses the same bf16-rounded inputs the kernel streams, with all
    # math in f32 — isolates the comparison to the kernel itself.
    x_rounded = x.astype(jnp.bfloat16).astype(jnp.float32)
    ref = actor_reference(x_rounded, params)

    assert out.shape == (B, ACT_DIM)
    assert jnp.allclose(jnp.sum(out, axis=-1), 1.0, atol=1e-5)
    assert jnp.allclose(out, ref, atol=2e-5, rtol=2e-5)

    print("KERNEL_OK")
</pallas_src>

<mosaic_0001>
module attributes {stable_mosaic.version = 11 : i64} {
  func.func @actor_kernel(%arg0: i32, %arg1: memref<16x16xbf16, #tpu.memory_space<vmem>>, %arg2: memref<16x64xf32, #tpu.memory_space<vmem>>, %arg3: memref<1x64xf32, #tpu.memory_space<vmem>>, %arg4: memref<64x64xf32, #tpu.memory_space<vmem>>, %arg5: memref<1x64xf32, #tpu.memory_space<vmem>>, %arg6: memref<64x128xf32, #tpu.memory_space<vmem>>, %arg7: memref<1x128xf32, #tpu.memory_space<vmem>>, %arg8: memref<16x128xf32, #tpu.memory_space<vmem>>) attributes {dimension_semantics = [#tpu.dimension_semantics<parallel>], iteration_bounds = array<i64: 1>, scalar_prefetch = 0 : i64, scratch_operands = 0 : i64, tpu.core_type = #tpu.core_type<tc>, window_params = [{transform_indices = @transform_0, window_bounds = array<i64: 16, 16>}, {pipeline_mode = #tpu.pipeline_mode<synchronous>, transform_indices = @transform_1, window_bounds = array<i64: 16, 64>}, {pipeline_mode = #tpu.pipeline_mode<synchronous>, transform_indices = @transform_2, window_bounds = array<i64: 1, 64>}, {pipeline_mode = #tpu.pipeline_mode<synchronous>, transform_indices = @transform_3, window_bounds = array<i64: 64, 64>}, {pipeline_mode = #tpu.pipeline_mode<synchronous>, transform_indices = @transform_4, window_bounds = array<i64: 1, 64>}, {pipeline_mode = #tpu.pipeline_mode<synchronous>, transform_indices = @transform_5, window_bounds = array<i64: 64, 128>}, {pipeline_mode = #tpu.pipeline_mode<synchronous>, transform_indices = @transform_6, window_bounds = array<i64: 1, 128>}, {transform_indices = @transform_7, window_bounds = array<i64: 16, 128>}]} {
    %c0 = arith.constant 0 : index
    %c0_0 = arith.constant 0 : index
    %0 = vector.load %arg1[%c0, %c0_0] : memref<16x16xbf16, #tpu.memory_space<vmem>>, vector<16x16xbf16>
    %1 = arith.extf %0 : vector<16x16xbf16> to vector<16x16xf32>
    %c0_1 = arith.constant 0 : index
    %c0_2 = arith.constant 0 : index
    %2 = vector.load %arg3[%c0_1, %c0_2] : memref<1x64xf32, #tpu.memory_space<vmem>>, vector<1x64xf32>
    %c0_3 = arith.constant 0 : index
    %c0_4 = arith.constant 0 : index
    %3 = vector.load %arg5[%c0_3, %c0_4] : memref<1x64xf32, #tpu.memory_space<vmem>>, vector<1x64xf32>
    %c0_5 = arith.constant 0 : index
    %c0_6 = arith.constant 0 : index
    %4 = vector.load %arg7[%c0_5, %c0_6] : memref<1x128xf32, #tpu.memory_space<vmem>>, vector<1x128xf32>
    %c0_7 = arith.constant 0 : index
    %c0_8 = arith.constant 0 : index
    %5 = vector.load %arg2[%c0_7, %c0_8] : memref<16x64xf32, #tpu.memory_space<vmem>>, vector<16x64xf32>
    %cst = arith.constant dense<0.000000e+00> : vector<16x64xf32>
    %6 = tpu.matmul %1, %5, %cst {dimension_numbers = #tpu.dot_dimension_numbers<[1], [0], [0], [1], [0, 0, 1, 1], [], []>} : vector<16x16xf32>, vector<16x64xf32>, vector<16x64xf32> -> vector<16x64xf32>
    %7 = vector.broadcast %2 : vector<1x64xf32> to vector<16x64xf32>
    %8 = arith.addf %6, %7 : vector<16x64xf32>
    %cst_9 = arith.constant 0.000000e+00 : f32
    %9 = vector.broadcast %cst_9 : f32 to vector<16x64xf32>
    %10 = arith.cmpf oge, %8, %9 : vector<16x64xf32>
    %cst_10 = arith.constant 0.00999999977 : f32
    %11 = vector.broadcast %cst_10 : f32 to vector<16x64xf32>
    %12 = arith.mulf %11, %8 : vector<16x64xf32>
    %13 = arith.select %10, %8, %12 : vector<16x64xi1>, vector<16x64xf32>
    %c0_11 = arith.constant 0 : index
    %c0_12 = arith.constant 0 : index
    %14 = vector.load %arg4[%c0_11, %c0_12] : memref<64x64xf32, #tpu.memory_space<vmem>>, vector<64x64xf32>
    %cst_13 = arith.constant dense<0.000000e+00> : vector<16x64xf32>
    %15 = tpu.matmul %13, %14, %cst_13 {dimension_numbers = #tpu.dot_dimension_numbers<[1], [0], [0], [1], [0, 0, 1, 1], [], []>} : vector<16x64xf32>, vector<64x64xf32>, vector<16x64xf32> -> vector<16x64xf32>
    %16 = vector.broadcast %3 : vector<1x64xf32> to vector<16x64xf32>
    %17 = arith.addf %15, %16 : vector<16x64xf32>
    %cst_14 = arith.constant 0.000000e+00 : f32
    %18 = vector.broadcast %cst_14 : f32 to vector<16x64xf32>
    %19 = arith.cmpf oge, %17, %18 : vector<16x64xf32>
    %cst_15 = arith.constant 0.00999999977 : f32
    %20 = vector.broadcast %cst_15 : f32 to vector<16x64xf32>
    %21 = arith.mulf %20, %17 : vector<16x64xf32>
    %22 = arith.select %19, %17, %21 : vector<16x64xi1>, vector<16x64xf32>
    %c0_16 = arith.constant 0 : index
    %c0_17 = arith.constant 0 : index
    %23 = vector.load %arg6[%c0_16, %c0_17] : memref<64x128xf32, #tpu.memory_space<vmem>>, vector<64x128xf32>
    %cst_18 = arith.constant dense<0.000000e+00> : vector<16x128xf32>
    %24 = tpu.matmul %22, %23, %cst_18 {dimension_numbers = #tpu.dot_dimension_numbers<[1], [0], [0], [1], [0, 0, 1, 1], [], []>} : vector<16x64xf32>, vector<64x128xf32>, vector<16x128xf32> -> vector<16x128xf32>
    %25 = vector.broadcast %4 : vector<1x128xf32> to vector<16x128xf32>
    %26 = arith.addf %24, %25 : vector<16x128xf32>
    %cst_19 = arith.constant dense<0xFF800000> : vector<16xf32>
    %27 = vector.multi_reduction <maximumf>, %26, %cst_19 [1] : vector<16x128xf32> to vector<16xf32>
    %28 = vector.shape_cast %27 : vector<16xf32> to vector<16x1xf32>
    %29 = vector.broadcast %28 : vector<16x1xf32> to vector<16x128xf32>
    %30 = arith.subf %26, %29 : vector<16x128xf32>
    %31 = math.exp %30 : vector<16x128xf32>
    %cst_20 = arith.constant dense<0.000000e+00> : vector<16xf32>
    %32 = vector.multi_reduction <add>, %31, %cst_20 [1] : vector<16x128xf32> to vector<16xf32>
    %33 = vector.shape_cast %32 : vector<16xf32> to vector<16x1xf32>
    %34 = tpu.reciprocal %33 : vector<16x1xf32> -> vector<16x1xf32>
    %35 = vector.broadcast %34 : vector<16x1xf32> to vector<16x128xf32>
    %36 = arith.mulf %31, %35 : vector<16x128xf32>
    %c0_21 = arith.constant 0 : index
    %c0_22 = arith.constant 0 : index
    %37 = vector.load %arg8[%c0_21, %c0_22] : memref<16x128xf32, #tpu.memory_space<vmem>>, vector<16x128xf32>
    tpu.vector_store %arg8[%c0_21, %c0_22], %36 {strides = array<i32>} : memref<16x128xf32, #tpu.memory_space<vmem>>, vector<16x128xf32>,
    return
  }
  func.func @transform_0(%arg0: i32) -> (i32, i32) {
    %c0_i32 = arith.constant 0 : i32
    %c0_i32_0 = arith.constant 0 : i32
    return %arg0, %c0_i32 : i32, i32
  }
  func.func @transform_1(%arg0: i32) -> (i32, i32) {
    %c0_i32 = arith.constant 0 : i32
    %c0_i32_0 = arith.constant 0 : i32
    %c0_i32_1 = arith.constant 0 : i32
    return %c0_i32, %c0_i32_0 : i32, i32
  }
  func.func @transform_2(%arg0: i32) -> (i32, i32) {
    %c0_i32 = arith.constant 0 : i32
    %c0_i32_0 = arith.constant 0 : i32
    %c0_i32_1 = arith.constant 0 : i32
    return %c0_i32, %c0_i32_0 : i32, i32
  }
  func.func @transform_3(%arg0: i32) -> (i32, i32) {
    %c0_i32 = arith.constant 0 : i32
    %c0_i32_0 = arith.constant 0 : i32
    %c0_i32_1 = arith.constant 0 : i32
    return %c0_i32, %c0_i32_0 : i32, i32
  }
  func.func @transform_4(%arg0: i32) -> (i32, i32) {
    %c0_i32 = arith.constant 0 : i32
    %c0_i32_0 = arith.constant 0 : i32
    %c0_i32_1 = arith.constant 0 : i32
    return %c0_i32, %c0_i32_0 : i32, i32
  }
  func.func @transform_5(%arg0: i32) -> (i32, i32) {
    %c0_i32 = arith.constant 0 : i32
    %c0_i32_0 = arith.constant 0 : i32
    %c0_i32_1 = arith.constant 0 : i32
    return %c0_i32, %c0_i32_0 : i32, i32
  }
  func.func @transform_6(%arg0: i32) -> (i32, i32) {
    %c0_i32 = arith.constant 0 : i32
    %c0_i32_0 = arith.constant 0 : i32
    %c0_i32_1 = arith.constant 0 : i32
    return %c0_i32, %c0_i32_0 : i32, i32
  }
  func.func @transform_7(%arg0: i32) -> (i32, i32) {
    %c0_i32 = arith.constant 0 : i32
    %c0_i32_0 = arith.constant 0 : i32
    return %arg0, %c0_i32 : i32, i32
  }
}

</mosaic_0001>

<bundles_post_ra>
// kernel: tpu_custom_call.1
= control target key start
LH: loop header
LB: loop body
LE: loop exit
PB: predicated region body
PF: predicated region fallthrough
CT: control target
= control target key end

     0   :  { %12 = vsyncpa [#allocation3], 0  ;;  %s817_s0 = inlined_call_operand.hbm [shape: bf16[16,16], index: 0, kind: input, shape index: {}]   ;;  %s818_s1 = inlined_call_operand.hbm [shape: f32[16,64], index: 1, kind: input, shape index: {}]   ;;  %s819_s2 = inlined_call_operand.vmem [shape: f32[1,64], index: 2, kind: input, shape index: {}]   ;;  %s820_s3 = inlined_call_operand.hbm [shape: f32[64,64], index: 3, kind: input, shape index: {}]   ;;  %s821_s4 = inlined_call_operand.vmem [shape: f32[1,64], index: 4, kind: input, shape index: {}]   ;;  %s822_s5 = inlined_call_operand.hbm [shape: f32[64,128], index: 5, kind: input, shape index: {}]   ;;  %s823_s6 = inlined_call_operand.vmem [shape: f32[1,128], index: 6, kind: input, shape index: {}]   ;;  %s824_s7 = inlined_call_operand.hbm [shape: f32[16,128], index: 7, kind: output, shape index: {}]  }
   0x1   :  { %13 = vsyncpa [#allocation6], 0 }
   0x2   :  { %14 = vsyncpa [#allocation9], 0 }
   0x3   :  { %15 = vsyncpa [#allocation4], 0  ;;  %s674_s24 = smov [#allocation5]   ;;  %s556_s28 = scalar_lea.hbm %s818_s1, 256 }
   0x4   :  { %s33_s25 = sshll.u32 %s674_s24, 4  ;;  %p557_p0 = scmp.ne.s32.totalorder %s818_s1, %s556_s28  ;;  %s34_s25 = int_to_ptr.vmem [resolvable:$true] %s33_s25 }
   0x5   :  { %p560_p1 = scmp.lt.u32.totalorder %s556_s28, %s818_s1 }
   0x7   :  { %p562_p2 = pnand %p560_p1, %p557_p0 }
   0x9   :  { %565 = shalt.err (!%p562_p2)
}
   0xa   :  { %s566_s10 = scalar_lea.vmem %s34_s25, 256  ;;  %p571_p4 = scmp.lt.s32.totalorder %s34_s25, %s34_s25 }
   0xb   :  { %p567_p3 = scmp.ne.s32.totalorder %s34_s25, %s566_s10  ;;  %p572_p5 = scmp.lt.s32.totalorder %s566_s10, %s566_s10 }
   0xd   :  { %p573_p6 = por %p572_p5, %p571_p4 }
   0xf   :  { %p574_p7 = pnand %p573_p6, %p567_p3 }
  0x11   :  { %577 = shalt.err (!%p574_p7)
}
  0x12   :  { %s675_s11 = smov 128   ;;  %s676_s12 = smov 8  }
  0x13   :  { %39 = dma.hbm_to_vmem [thread:$0]  %s818_s1, 256, %s34_s25, [#allocation6], %s675_s11, %s675_s11, %s676_s12  }
  0x14   :  { %s677_s15 = smov [#allocation2]   ;;  %s578_s19 = scalar_lea.hbm %s817_s0, 128 }
  0x15   :  { %s21_s16 = sshll.u32 %s677_s15, 4  ;;  %p579_p8 = scmp.ne.s32.totalorder %s817_s0, %s578_s19  ;;  %s22_s16 = int_to_ptr.vmem [resolvable:$true] %s21_s16 }
  0x16   :  { %p582_p9 = scmp.lt.u32.totalorder %s578_s19, %s817_s0 }
  0x18   :  { %p584_p10 = pnand %p582_p9, %p579_p8 }
  0x1a   :  { %587 = shalt.err (!%p584_p10)
}
  0x1b   :  { %s588_s24 = scalar_lea.vmem %s22_s16, 128  ;;  %p593_p12 = scmp.lt.s32.totalorder %s22_s16, %s22_s16 }
  0x1c   :  { %p589_p11 = scmp.ne.s32.totalorder %s22_s16, %s588_s24  ;;  %p594_p13 = scmp.lt.s32.totalorder %s588_s24, %s588_s24 }
  0x1e   :  { %p595_p0 = por %p594_p13, %p593_p12 }
  0x20   :  { %p596_p1 = pnand %p595_p0, %p589_p11 }
  0x22   :  { %599 = shalt.err (!%p596_p1)
}
  0x23   :  { %s678_s1 = smov 64   ;;  %s679_s25 = smov 4  }
  0x24   :  { %27 = dma.hbm_to_vmem [thread:$0]  %s817_s0, 128, %s22_s16, [#allocation3], %s678_s1, %s678_s1, %s679_s25  }
  0x25   :  { %s680_s28 = smov [#allocation7]   ;;  %s681_s30 = smov [#allocation8]  }
  0x26   :  { %s47_s29 = sshll.u32 %s680_s28, 4  ;;  %s61_s8 = sshll.u32 %s681_s30, 4  ;;  %s48_s29 = int_to_ptr.vmem [resolvable:$true] %s47_s29  ;;  %s750_s8 = int_to_ptr.vmem [resolvable:$true] %s61_s8 }
  0x27   :  { %s600_s13 = scalar_lea.hbm %s820_s3, 1024 }
  0x28   :  { %p601_p2 = scmp.ne.s32.totalorder %s820_s3, %s600_s13  ;;  %p604_p3 = scmp.lt.u32.totalorder %s600_s13, %s820_s3 }
  0x2a   :  { %p606_p4 = pnand %p604_p3, %p601_p2 }
  0x2c   :  { %609 = shalt.err (!%p606_p4)
}
  0x2d   :  { %s610_s0 = scalar_lea.vmem %s48_s29, 1024  ;;  %p615_p6 = scmp.lt.s32.totalorder %s48_s29, %s48_s29 }
  0x2e   :  { %p611_p5 = scmp.ne.s32.totalorder %s48_s29, %s610_s0  ;;  %p616_p7 = scmp.lt.s32.totalorder %s610_s0, %s610_s0 }
  0x30   :  { %p617_p8 = por %p616_p7, %p615_p6 }
  0x32   :  { %p618_p9 = pnand %p617_p8, %p611_p5 }
  0x34   :  { %621 = shalt.err (!%p618_p9)
}
  0x35   :  { %53 = dma.hbm_to_vmem [thread:$0]  %s820_s3, 1024, %s48_s29, [#allocation6], %s675_s11, %s675_s11, %s676_s12  }
  0x36   :  { %s622_s22 = scalar_lea.hbm %s822_s5, 1024 }
  0x37   :  { %p623_p10 = scmp.ne.s32.totalorder %s822_s5, %s622_s22  ;;  %p626_p11 = scmp.lt.u32.totalorder %s622_s22, %s822_s5 }
  0x39   :  { %p628_p12 = pnand %p626_p11, %p623_p10 }
  0x3b   :  { %631 = shalt.err (!%p628_p12)
}
  0x3c   :  { %s632_s26 = scalar_lea.vmem %s750_s8, 1024  ;;  %p637_p0 = scmp.lt.s32.totalorder %s750_s8, %s750_s8 }
  0x3d   :  { %p633_p13 = scmp.ne.s32.totalorder %s750_s8, %s632_s26  ;;  %p638_p1 = scmp.lt.s32.totalorder %s632_s26, %s632_s26 }
  0x3f   :  { %p639_p2 = por %p638_p1, %p637_p0 }
  0x41   :  { %p640_p3 = pnand %p639_p2, %p633_p13 }
  0x43   :  { %643 = shalt.err (!%p640_p3)
}
  0x44   :  { %67 = dma.hbm_to_vmem [thread:$0]  %s822_s5, 1024, %s750_s8, [#allocation9], %s675_s11, %s675_s11, %s676_s12  }
  0x45   :  { %666 = dma.done.wait [#allocation3], 128  }
  0x46   :  { %667 = vsyncadd [#allocation3], 4294967168 }
  0x47   :  { %668 = dma.done.wait [#allocation6], 1280  }
  0x48   :  { %669 = vsyncadd [#allocation6], 4294966016 }
  0x49   :  { %670 = dma.done.wait [#allocation9], 1024  }
  0x4a   :  { %671 = vsyncadd [#allocation9], 4294966272  ;;  %v89_v0 = vld [vmem:[#allocation5] sm:$0xff]  ;;  %v90_v1 = vld [vmem:[#allocation5 + $0x8] sm:$0xff]  ;;  %vm97_vm0 = vcmask 130048   ;;  %vm199_vm3 = vcmask 523264  }
  0x4b   :  { %v431_v2 = vld [vmem:[#allocation2] sm:$0xff]   ;;  %v503_v3 = vpack.c.bf16 %v90_v1, %v89_v0  ;;  %v185_v5 = vld [vmem:[#allocation7] sm:$0xff]  ;;  %v187_v7 = vld [vmem:[#allocation7 + $0x10] sm:$0xff] }
  0x4c   :  { %v432_v4 = vunpack.c.l.bf16 %v431_v2  ;;  %v186_v6 = vld [vmem:[#allocation7 + $0x8] sm:$0xff]  ;;  %v188_v9 = vld [vmem:[#allocation7 + $0x18] sm:$0xff]  ;;  %v433_v10 = vunpack.c.h.bf16 %v431_v2  ;;  %v189_v12 = vld [vmem:[#allocation7 + $0x20] sm:$0xff] }
  0x4d   :  { %v507_v8 = vpack.c.bf16 %v186_v6, %v185_v5  ;;  %504 = vmatprep.subr.bf16.mxu0 %v503_v3  ;;  %v511_v11 = vpack.c.bf16 %v188_v9, %v187_v7  ;;  %v190_v13 = vld [vmem:[#allocation7 + $0x28] sm:$0xff]  ;;  %v191_v15 = vld [vmem:[#allocation7 + $0x30] sm:$0xff]  ;;  %v192_v16 = vld [vmem:[#allocation7 + $0x38] sm:$0xff] }
  0x4e   :  { %462 = vmatprep.mubr.msk.f32.mxu0 %vm97_vm0, %v432_v4  ;;  %506 = vmatpush3.bf16.msra.mxu0 %v503_v3  ;;  %v515_v14 = vpack.c.bf16 %v190_v13, %v189_v12  ;;  %v519_v17 = vpack.c.bf16 %v192_v16, %v191_v15  ;;  %v287_v18 = vld [vmem:[#allocation8] sm:$0xff]  ;;  %v288_v19 = vld [vmem:[#allocation8 + $0x8] sm:$0xff]  ;;  %v289_v20 = vld [vmem:[#allocation8 + $0x10] sm:$0xff] }
  0x4f   :  { %508 = vmatprep.subr.bf16.mxu1 %v507_v8  ;;  %v523_v21 = vpack.c.bf16 %v288_v19, %v287_v18  ;;  %v290_v22 = vld [vmem:[#allocation8 + $0x18] sm:$0xff]  ;;  %v421_v24 = vld [vmem:[%s819_s2] ss:$0 sm:$0xff]  ;;  %v291_v33 = vld [vmem:[#allocation8 + $0x20] sm:$0xff] }
  0x50   :  { %510 = vmatpush3.bf16.msra.mxu1 %v507_v8  ;;  %v527_v23 = vpack.c.bf16 %v290_v22, %v289_v20  ;;  %v292_v34 = vld [vmem:[#allocation8 + $0x28] sm:$0xff]  ;;  %v293_v36 = vld [vmem:[#allocation8 + $0x30] sm:$0xff]  ;;  %v294_v37 = vld [vmem:[#allocation8 + $0x38] sm:$0xff] }
  0x51   :  { %512 = vmatprep.subr.bf16.mxu1 %v511_v11  ;;  %463 = vmatmul.mubr.msk.f32.vlgmr.msra.gmra.mrb[0].mxu0 %vm97_vm0, %v433_v10  ;;  %v531_v35 = vpack.c.bf16 %v292_v34, %v291_v33  ;;  %v535_v38 = vpack.c.bf16 %v294_v37, %v293_v36  ;;  %v424_v39 = vld [vmem:[%s821_s4] ss:$0 sm:$0xff]  ;;  %s682_s4 = smov [#allocation10]  }
  0x52   :  { %524 = vmatprep.subr.bf16.mxu0 %v523_v21  ;;  %v427_v48 = vld [vmem:[%s823_s6] ss:$0 sm:$0xff]  ;;  %s407_s6 = sshll.u32 %s682_s4, 4  ;;  %s408_s6 = int_to_ptr.vmem [resolvable:$true] %s407_s6 }
  0x53   :  { %526 = vmatpush3.bf16.msra.mxu0 %v523_v21  ;;  %s644_s9 = scalar_lea.vmem %s408_s6, 256  ;;  %p649_p5 = scmp.lt.s32.totalorder %s408_s6, %s408_s6 }
  0x54   :  { %514 = vmatpush3.bf16.msra.mxu1 %v511_v11  ;;  %528 = vmatprep.subr.bf16.mxu0 %v527_v23  ;;  %p645_p4 = scmp.ne.s32.totalorder %s408_s6, %s644_s9  ;;  %p650_p6 = scmp.lt.s32.totalorder %s644_s9, %s644_s9 }
  0x55   :  { %516 = vmatprep.subr.bf16.mxu1 %v515_v14 }
  0x56   :  { %p651_p7 = por %p650_p6, %p649_p5 }
  0x57   :  { %530 = vmatpush3.bf16.msra.mxu0 %v527_v23 }
  0x58   :  { %518 = vmatpush3.bf16.msra.mxu1 %v515_v14  ;;  %532 = vmatprep.subr.bf16.mxu0 %v531_v35  ;;  %p652_p8 = pnand %p651_p7, %p645_p4 }
  0x59   :  { %520 = vmatprep.subr.bf16.mxu1 %v519_v17 }
  0x5b   :  { %534 = vmatpush3.bf16.msra.mxu0 %v531_v35 }
  0x5c   :  { %522 = vmatpush3.bf16.msra.mxu1 %v519_v17  ;;  %536 = vmatprep.subr.bf16.mxu0 %v535_v38 }
  0x5f   :  { %538 = vmatpush3.bf16.msra.mxu0 %v535_v38 }
 0x124   :  { %v464_v25 = vpop.f32.mrb[0].mxu0 }
 0x125   :  { %v176_v26 = vadd.f32 %v464_v25, %v421_v24  ;;  %v170_v27 = vpop.f32.mrb[1].mxu0 }
 0x126   :  { %v171_v28 = vadd.f32 %v421_v24, %v170_v27 }
 0x127   :  { %v182_v29 = vmul.f32 0.01, %v176_v26  ;;  %vm180_vm1 = vcmp.ge.f32.partialorder %v176_v26, 0.0 }
 0x128   :  { %vm179_vm2 = vcmp.ge.f32.partialorder %v171_v28, 0.0  ;;  %v181_v30 = vmul.f32 0.01, %v171_v28 }
 0x129   :  { %v184_v32 = vsel %vm180_vm1, %v176_v26, %v182_v29 }
 0x12a   :  { %v183_v31 = vsel %vm179_vm2, %v171_v28, %v181_v30 }
 0x12b   :  { %481 = vmatprep.mubr.msk.f32.mxu1 %vm199_vm3, %v183_v31 }
 0x12c   :  { %482 = vmatmul.mubr.msk.f32.vlgmr.msra.gmra.mrb[0].mxu1 %vm199_vm3, %v184_v32 }
 0x1ff   :  { %v483_v40 = vpop.f32.mrb[0].mxu1 }
 0x200   :  { %v278_v41 = vadd.f32 %v483_v40, %v424_v39  ;;  %v272_v42 = vpop.f32.mrb[1].mxu1 }
 0x201   :  { %v273_v43 = vadd.f32 %v424_v39, %v272_v42 }
 0x202   :  { %v284_v44 = vmul.f32 0.01, %v278_v41  ;;  %vm282_vm4 = vcmp.ge.f32.partialorder %v278_v41, 0.0 }
 0x203   :  { %vm281_vm5 = vcmp.ge.f32.partialorder %v273_v43, 0.0  ;;  %v283_v45 = vmul.f32 0.01, %v273_v43 }
 0x204   :  { %v286_v47 = vsel %vm282_vm4, %v278_v41, %v284_v44 }
 0x205   :  { %v285_v46 = vsel %vm281_vm5, %v273_v43, %v283_v45 }
 0x206   :  { %500 = vmatprep.mubr.msk.f32.mxu0 %vm199_vm3, %v285_v46 }
 0x207   :  { %501 = vmatmul.mubr.msk.f32.vlgmr.msra.gmra.mrb[2].mxu0 %vm199_vm3, %v286_v47 }
 0x2da   :  { %v502_v49 = vpop.f32.mrb[2].mxu0 }
 0x2db   :  { %v373_v50 = vpop.f32.mrb[3].mxu0  ;;  %v379_v52 = vadd.f32 %v502_v49, %v427_v48 }
 0x2dc   :  { %v374_v51 = vadd.f32 %v427_v48, %v373_v50 }
 0x2de   :  { %382 = vmax.xlane.f32.xlu0 %v374_v51 }
 0x2e2   :  { %384 = vmax.xlane.f32.xlu0 %v379_v52 }
 0x36b   :  { %v383_v53 = vpop.xlane.xlu0 %382 }
 0x36c   :  { %v386_v54 = vsub.f32 %v374_v51, %v383_v53 }
 0x36e   :  { %v388_v55 = vmul.f32 1.442695, %v386_v54 }
 0x36f   :  { %v385_v56 = vpop.xlane.xlu0 %384 }
 0x370   :  { %548 = vpow2.f32 %v388_v55  ;;  %v387_v57 = vsub.f32 %v379_v52, %v385_v56 }
 0x372   :  { %v390_v58 = vmul.f32 1.442695, %v387_v57 }
 0x374   :  { %550 = vpow2.f32 %v390_v58 }
 0x37a   :  { %v549_v59 = vpop.eup %548 }
 0x37b   :  { %392 = vadd.xlane.f32.xlu1 %v549_v59 }
 0x37e   :  { %v551_v60 = vpop.eup %550 }
 0x37f   :  { %394 = vadd.xlane.f32.xlu1 %v551_v60 }
 0x408   :  { %v393_v61 = vpop.xlane.xlu1 %392 }
 0x409   :  { %552 = vrcp.f32 %v393_v61 }
 0x40c   :  { %v395_v62 = vpop.xlane.xlu1 %394 }
 0x40d   :  { %554 = vrcp.f32 %v395_v62 }
 0x413   :  { %v553_v63 = vpop.eup %552 }
 0x414   :  { %v398_v0 = vmul.f32 %v553_v63, %v549_v59 }
 0x416   :  { %400 = vst [vmem:[#allocation10] sm:$0xff] %v398_v0 }
 0x417   :  { %v555_v1 = vpop.eup %554 }
 0x418   :  { %v399_v2 = vmul.f32 %v555_v1, %v551_v60 }
 0x41a   :  { %401 = vst [vmem:[#allocation10 + $0x8] sm:$0xff] %v399_v2 }
 0x41b   :  { %655 = shalt.err (!%p652_p8)
}
 0x41c   :  { %s656_s14 = scalar_lea.hbm %s824_s7, 256 }
 0x41d   :  { %p657_p9 = scmp.ne.s32.totalorder %s824_s7, %s656_s14  ;;  %p660_p10 = scmp.lt.u32.totalorder %s656_s14, %s824_s7 }
 0x41f   :  { %p662_p11 = pnand %p660_p10, %p657_p9 }
 0x421   :  { %665 = shalt.err (!%p662_p11)
}
 0x422   :  { %413 = dma.vmem_to_hbm [thread:$0]  %s408_s6, 256, %s824_s7, [#allocation4], %s675_s11, %s675_s11, %s676_s12  }
 0x423   :  { %672 = dma.done.wait [#allocation4], 256  }
 0x424   :  { %673 = vsyncadd [#allocation4], 4294967040 }
 0x425   :  { %417 = vsyncpa [#allocation3], 1 }
 0x426   :  { %418 = vsyncpa [#allocation6], 1 }
 0x427   :  { %419 = vsyncpa [#allocation9], 1 }
 0x428   :  { %420 = vsyncpa [#allocation4], 1 }

</bundles_post_ra>
